<compile_context>
chip_gen: v7x
topology: tpu7x:2x2x1
jax: 0.10.0
libtpu: 0.0.40
codegen_flags: <defaults>
</compile_context>

<pallas_src>
import functools

import numpy as np
import jax
import jax.numpy as jnp
from jax import lax
from jax.experimental import pallas as pl
from jax.experimental.pallas import tpu as pltpu

NEG_INF = float("-inf")
_LANE = 128


def _mention_band_kernel(x_ref, mask_ref, w_ref, b_ref, out_ref, *, max_len, band_w):
    """One grid step = one block of batch rows.

    x_ref:    (block_b * S, H) bf16  activations (batch rows stacked on sublanes)
    mask_ref: (block_b, S, 1)  f32   1.0 = valid token
    w_ref:    (H, 3)           bf16  classifier weight (torch weight^T)
    b_ref:    (1, 3)           f32   classifier bias
    out_ref:  (block_b, S, band_w) f32
              out[b, i, d] = mention score of span [i, i+d] when d <= max_len,
              i+d < S and mask[i+d]; -inf otherwise.  Lanes d > max_len are padding
              so the store stays a full, unmasked (lane-dense) slab.
    """
    block_b, S, _ = mask_ref.shape
    L = max_len

    # -- one batched MXU matmul for the whole block (bf16 in, f32 accumulate) --------
    logits = jnp.dot(x_ref[...], w_ref[...],
                     preferred_element_type=jnp.float32) + b_ref[...]     # (block_b*S, 3)

    # -- constants generated in-kernel (no (S,S) HBM input / double buffer) ----------
    row_i = lax.broadcasted_iota(jnp.int32, (S, S), 0)
    col_k = lax.broadcasted_iota(jnp.int32, (S, S), 1)
    tri_le = (col_k <= row_i).astype(jnp.float32)          # tri_le[i, k] = [k <= i]

    zpad_rows = jnp.zeros((L, 1), jnp.float32) if L > 0 else None
    pad_w = band_w - (L + 1)
    zpad_lanes = jnp.zeros((S, pad_w), jnp.float32) if pad_w > 0 else None

    for bb in range(block_b):
        lg = logits[bb * S:(bb + 1) * S, :]                 # (S, 3) f32
        start_c = lg[:, 0:1]
        end_c = lg[:, 1:2]
        ment_c = lg[:, 2:3]

        maskf = mask_ref[bb]                                # (S, 1) f32
        mm = ment_c * maskf                                 # masked mention log-probs
        invalid = 1.0 - maskf

        # Inclusive prefix sums of (masked mention, #invalid) via one small f32
        # matmul against the triangular constant (exact 0/1 accumulation for counts).
        cum = jnp.dot(tri_le, jnp.concatenate([mm, invalid], axis=1),
                      preferred_element_type=jnp.float32)   # (S, 2)
        cumend = cum[:, 0:1]                                # sum_{k<=i} mask*ment
        cnt_le = cum[:, 1:2]                                # #invalid k <= i
        cumstart = cumend - mm                              # sum_{k< i}
        cnt_lt = cnt_le - invalid                           # #invalid k <  i

        # score(i, j) = (start[i] - cumstart[i]) + (end[j] + cumend[j]); the count
        # thresholds reproduce torch's -inf / NaN propagation through its cumsums.
        col_part = start_c - jnp.where(cnt_lt > 0.5, NEG_INF, cumstart)   # (S, 1)
        row_part = end_c + jnp.where(cnt_le > 0.5, NEG_INF, cumend)       # (S, 1)

        # Shift the per-end-position column so lane d of row i holds position j = i+d
        # (pure data movement -> safe with -inf values), then add the start column.
        if L > 0:
            rp_pad = jnp.concatenate([row_part, zpad_rows], axis=0)       # (S+L, 1)
            vd_pad = jnp.concatenate([maskf, zpad_rows], axis=0)          # (S+L, 1)
        else:
            rp_pad, vd_pad = row_part, maskf
        rp_cols = [rp_pad[d:d + S, :] for d in range(L + 1)]
        vd_cols = [vd_pad[d:d + S, :] for d in range(L + 1)]
        if zpad_lanes is not None:
            rp_cols.append(zpad_lanes)
            vd_cols.append(zpad_lanes)
        rp_band = jnp.concatenate(rp_cols, axis=1)                        # (S, band_w)
        vd_band = jnp.concatenate(vd_cols, axis=1)                        # (S, band_w)

        out_ref[bb] = jnp.where(vd_band > 0.5, col_part + rp_band, NEG_INF)


def _footprint_bytes(bb, S, H, band_w):
    """Approximate per-grid-step VMEM working set (double-buffered I/O + temps)."""
    x_b = bb * S * H * 2                       # bf16 activation block
    m_b = bb * S * _LANE * 4                   # mask column (lane-padded layout)
    o_b = bb * S * band_w * 4                  # band output block
    tmp = 16 * S * _LANE * 4 + S * S * 4       # narrow per-row temps + tri constant
    wts = H * 3 * 2 + _LANE * 4                # weights / bias
    return 2 * (x_b + m_b + o_b) + tmp + wts


def _pick_block_b(B, S, H, band_w, budget_bytes):
    """Largest batch block whose working set fits; prefer >= 2 grid steps."""
    fitting = [c for c in (16, 8, 4, 2, 1)
               if B % c == 0 and _footprint_bytes(c, S, H, band_w) + (2 << 20) <= budget_bytes]
    if not fitting:
        return 1
    for c in fitting:
        if B // c >= 2:
            return c
    return fitting[-1]


def mention_scores_head(bert_output, mask_ctxt, w, b, max_mention_length=10,
                        block_b=None):
    """Returns (mention_scores (B, K), mention_bounds (B, K, 2)) like the torch module."""
    B, S, H = bert_output.shape
    L = (S - 1) if max_mention_length is None else min(max_mention_length, S - 1)
    band_w = ((L + 1 + _LANE - 1) // _LANE) * _LANE          # lane-dense band width

    try:
        vmem_cap = int(pltpu.get_tpu_info().vmem_capacity_bytes)
    except Exception:
        vmem_cap = 64 * 1024 * 1024                          # conservative (v7x-sized)
    budget = min(int(vmem_cap * 0.75), 96 * 1024 * 1024)

    if block_b is None:
        block_b = _pick_block_b(B, S, H, band_w, budget)
    assert B % block_b == 0, "batch must be divisible by block_b"
    # TODO(synk): pad S up to a multiple of 8 for arbitrary sequence lengths; the
    # (block_b*S, H) activation block needs a sublane-aligned first dim unless it
    # spans the whole array.
    if (block_b * S) % 8 != 0 and block_b != B:
        block_b = B

    fp = _footprint_bytes(block_b, S, H, band_w)
    vmem_limit = int(min(max(fp + 8 * 1024 * 1024, 16 * 1024 * 1024),
                         vmem_cap - 8 * 1024 * 1024))

    # In production the activations would already be bf16; the cast is a demo artifact.
    x2 = bert_output.reshape(B * S, H).astype(jnp.bfloat16)
    mask_f = mask_ctxt.astype(jnp.float32).reshape(B, S, 1)
    w_bf = w.astype(jnp.bfloat16)                            # (H, 3) = torch weight^T
    b_f = b.astype(jnp.float32).reshape(1, 3)

    kernel = functools.partial(_mention_band_kernel, max_len=L, band_w=band_w)
    grid = (B // block_b,)
    band = pl.pallas_call(
        kernel,
        out_shape=jax.ShapeDtypeStruct((B, S, band_w), jnp.float32),
        grid_spec=pltpu.PrefetchScalarGridSpec(
            num_scalar_prefetch=0,
            grid=grid,
            in_specs=[
                pl.BlockSpec((block_b * S, H), lambda i: (i, 0)),
                pl.BlockSpec((block_b, S, 1), lambda i: (i, 0, 0)),
                pl.BlockSpec((H, 3), lambda i: (0, 0)),
                pl.BlockSpec((1, 3), lambda i: (0, 0)),
            ],
            out_specs=pl.BlockSpec((block_b, S, band_w), lambda i: (i, 0, 0)),
        ),
        compiler_params=pltpu.CompilerParams(
            dimension_semantics=("parallel",),
            vmem_limit_bytes=vmem_limit,
        ),
    )(x2, mask_f, w_bf, b_f)

    # ---- plain-JAX glue: re-insert the constant -inf (j < i) kept entries and ----
    # ---- restore torch's row-major (start i, end j) ordering via static tables ----
    rows, cols, bounds = [], [], []
    for i in range(S):
        for j in range(min(S, i + L + 1)):
            rows.append(i)
            cols.append(0 if j < i else j - i + 1)            # 0 -> -inf filler column
            bounds.append((i, j))
    rows = np.asarray(rows, np.int32)
    cols = np.asarray(cols, np.int32)
    bounds = np.asarray(bounds, np.int32)
    K = rows.shape[0]

    ext = jnp.concatenate(
        [jnp.full((B, S, 1), NEG_INF, jnp.float32), band[:, :, :L + 1]], axis=-1)
    scores = ext[:, rows, cols]                               # (B, K)
    mention_bounds = jnp.broadcast_to(jnp.asarray(bounds)[None], (B, K, 2))
    return scores, mention_bounds


def _reference(bert_output, mask_ctxt, w, b, max_mention_length):
    """Pure-JAX mirror of the torch forward (qa_linear)."""
    B, S, _ = bert_output.shape
    logits = bert_output @ w + b
    ninf = jnp.float32(NEG_INF)
    start = jnp.where(mask_ctxt, logits[..., 0], ninf)
    end = jnp.where(mask_ctxt, logits[..., 1], ninf)
    ment = jnp.where(mask_ctxt, logits[..., 2], ninf)
    scores = start[:, :, None] + end[:, None, :]
    cumend = jnp.cumsum(ment, axis=1)
    cumstart = jnp.concatenate([jnp.zeros((B, 1), jnp.float32), cumend[:, :-1]], axis=1)
    scores = scores + (cumend[:, None, :] - cumstart[:, :, None])
    ii = jnp.arange(S)[:, None]
    jj = jnp.arange(S)[None, :]
    valid = (jj >= ii)[None] & mask_ctxt[:, None, :]
    scores = jnp.where(valid, scores, ninf).reshape(B, S * S)
    starts = np.repeat(np.arange(S), S)
    ends = np.tile(np.arange(S), S)
    keep = np.nonzero((ends - starts) <= max_mention_length)[0]
    ref_bounds = np.stack([starts[keep], ends[keep]], axis=-1).astype(np.int32)
    return scores[:, keep], ref_bounds


if __name__ == "__main__":
    B, S, H = 4, 8, 32
    MAX_MENTION_LEN = 4   # smaller than the default 10 so the filter is exercised at S=8

    k0, k1, k2 = jax.random.split(jax.random.PRNGKey(0), 3)
    bert_output = jax.random.normal(k0, (B, S, H), dtype=jnp.float32)
    w = jax.random.normal(k1, (H, 3), dtype=jnp.float32) * 0.02   # Linear(H, 3) weight^T
    b = jax.random.normal(k2, (3,), dtype=jnp.float32) * 0.02     # Linear bias

    # mask_ctxt: valid-prefix attention mask (variable lengths)
    lengths = jnp.array([6, 8, 3, 5], dtype=jnp.int32)
    mask_ctxt = jnp.arange(S, dtype=jnp.int32)[None, :] < lengths[:, None]

    scores, bounds = mention_scores_head(bert_output, mask_ctxt, w, b, MAX_MENTION_LEN)
    scores = jax.block_until_ready(scores)
    bounds = jax.block_until_ready(bounds)

    ref_scores, ref_bounds = _reference(bert_output, mask_ctxt, w, b, MAX_MENTION_LEN)
    assert scores.shape == ref_scores.shape, (scores.shape, ref_scores.shape)
    assert bounds.shape == (B, ref_scores.shape[1], 2), bounds.shape
    assert np.array_equal(np.asarray(bounds[0]), ref_bounds)
    assert np.allclose(np.asarray(scores), np.asarray(ref_scores),
                       rtol=2e-2, atol=2e-2, equal_nan=True)

    print("KERNEL_OK")
</pallas_src>

<mosaic_0001>
module attributes {stable_mosaic.version = 11 : i64} {
  func.func @_mention_band_kernel(%arg0: i32, %arg1: memref<16x32xbf16, #tpu.memory_space<vmem>>, %arg2: memref<2x8x1xf32, #tpu.memory_space<vmem>>, %arg3: memref<32x3xbf16, #tpu.memory_space<vmem>>, %arg4: memref<1x3xf32, #tpu.memory_space<vmem>>, %arg5: memref<2x8x128xf32, #tpu.memory_space<vmem>>) attributes {dimension_semantics = [#tpu.dimension_semantics<parallel>], iteration_bounds = array<i64: 2>, scalar_prefetch = 0 : i64, scratch_operands = 0 : i64, tpu.core_type = #tpu.core_type<tc>, window_params = [{transform_indices = @transform_0, window_bounds = array<i64: 16, 32>}, {transform_indices = @transform_1, window_bounds = array<i64: 2, 8, 1>}, {pipeline_mode = #tpu.pipeline_mode<synchronous>, transform_indices = @transform_2, window_bounds = array<i64: 32, 3>}, {pipeline_mode = #tpu.pipeline_mode<synchronous>, transform_indices = @transform_3, window_bounds = array<i64: 1, 3>}, {transform_indices = @transform_4, window_bounds = array<i64: 2, 8, 128>}]} {
    %c0 = arith.constant 0 : index
    %c0_0 = arith.constant 0 : index
    %0 = vector.load %arg1[%c0, %c0_0] : memref<16x32xbf16, #tpu.memory_space<vmem>>, vector<16x32xbf16>
    %c0_1 = arith.constant 0 : index
    %c0_2 = arith.constant 0 : index
    %1 = vector.load %arg3[%c0_1, %c0_2] : memref<32x3xbf16, #tpu.memory_space<vmem>>, vector<32x3xbf16>
    %cst = arith.constant dense<0.000000e+00> : vector<16x3xf32>
    %2 = tpu.matmul %0, %1, %cst {dimension_numbers = #tpu.dot_dimension_numbers<[1], [0], [0], [1], [0, 0, 1, 1], [], []>} : vector<16x32xbf16>, vector<32x3xbf16>, vector<16x3xf32> -> vector<16x3xf32>
    %c0_3 = arith.constant 0 : index
    %c0_4 = arith.constant 0 : index
    %3 = vector.load %arg4[%c0_3, %c0_4] : memref<1x3xf32, #tpu.memory_space<vmem>>, vector<1x3xf32>
    %4 = vector.broadcast %3 : vector<1x3xf32> to vector<16x3xf32>
    %5 = arith.addf %2, %4 : vector<16x3xf32>
    %6 = tpu.iota {dimensions = array<i32: 0>} : vector<8x8xi32>
    %7 = tpu.iota {dimensions = array<i32: 1>} : vector<8x8xi32>
    %8 = arith.cmpi sle, %7, %6 : vector<8x8xi32>
    %9 = arith.extui %8 : vector<8x8xi1> to vector<8x8xi32>
    %10 = arith.sitofp %9 : vector<8x8xi32> to vector<8x8xf32>
    %cst_5 = arith.constant 0.000000e+00 : f32
    %11 = vector.broadcast %cst_5 : f32 to vector<4x1xf32>
    %cst_6 = arith.constant 0.000000e+00 : f32
    %12 = vector.broadcast %cst_6 : f32 to vector<8x123xf32>
    %13 = vector.extract_strided_slice %5 {offsets = [0, 0], sizes = [8, 3], strides = [1, 1]} : vector<16x3xf32> to vector<8x3xf32>
    %14 = vector.extract_strided_slice %13 {offsets = [0, 0], sizes = [8, 1], strides = [1, 1]} : vector<8x3xf32> to vector<8x1xf32>
    %15 = vector.extract_strided_slice %13 {offsets = [0, 1], sizes = [8, 1], strides = [1, 1]} : vector<8x3xf32> to vector<8x1xf32>
    %16 = vector.extract_strided_slice %13 {offsets = [0, 2], sizes = [8, 1], strides = [1, 1]} : vector<8x3xf32> to vector<8x1xf32>
    %c0_7 = arith.constant 0 : index
    %c0_8 = arith.constant 0 : index
    %c0_9 = arith.constant 0 : index
    %17 = vector.load %arg2[%c0_7, %c0_8, %c0_9] : memref<2x8x1xf32, #tpu.memory_space<vmem>>, vector<1x8x1xf32>
    %18 = vector.shape_cast %17 : vector<1x8x1xf32> to vector<8x1xf32>
    %19 = arith.mulf %16, %18 : vector<8x1xf32>
    %cst_10 = arith.constant 1.000000e+00 : f32
    %20 = vector.broadcast %cst_10 : f32 to vector<8x1xf32>
    %21 = arith.subf %20, %18 : vector<8x1xf32>
    %22 = tpu.concatenate %19, %21 in 1 : vector<8x1xf32>, vector<8x1xf32> -> vector<8x2xf32>
    %cst_11 = arith.constant dense<0.000000e+00> : vector<8x2xf32>
    %23 = tpu.matmul %10, %22, %cst_11 {dimension_numbers = #tpu.dot_dimension_numbers<[1], [0], [0], [1], [0, 0, 1, 1], [], []>} : vector<8x8xf32>, vector<8x2xf32>, vector<8x2xf32> -> vector<8x2xf32>
    %24 = vector.extract_strided_slice %23 {offsets = [0, 0], sizes = [8, 1], strides = [1, 1]} : vector<8x2xf32> to vector<8x1xf32>
    %25 = vector.extract_strided_slice %23 {offsets = [0, 1], sizes = [8, 1], strides = [1, 1]} : vector<8x2xf32> to vector<8x1xf32>
    %26 = arith.subf %24, %19 : vector<8x1xf32>
    %27 = arith.subf %25, %21 : vector<8x1xf32>
    %cst_12 = arith.constant 5.000000e-01 : f32
    %28 = vector.broadcast %cst_12 : f32 to vector<8x1xf32>
    %29 = arith.cmpf ogt, %27, %28 : vector<8x1xf32>
    %cst_13 = arith.constant 0xFF800000 : f32
    %30 = vector.broadcast %cst_13 : f32 to vector<8x1xf32>
    %31 = arith.select %29, %30, %26 : vector<8x1xi1>, vector<8x1xf32>
    %32 = arith.subf %14, %31 : vector<8x1xf32>
    %cst_14 = arith.constant 5.000000e-01 : f32
    %33 = vector.broadcast %cst_14 : f32 to vector<8x1xf32>
    %34 = arith.cmpf ogt, %25, %33 : vector<8x1xf32>
    %cst_15 = arith.constant 0xFF800000 : f32
    %35 = vector.broadcast %cst_15 : f32 to vector<8x1xf32>
    %36 = arith.select %34, %35, %24 : vector<8x1xi1>, vector<8x1xf32>
    %37 = arith.addf %15, %36 : vector<8x1xf32>
    %38 = tpu.concatenate %37, %11 in 0 : vector<8x1xf32>, vector<4x1xf32> -> vector<12x1xf32>
    %39 = tpu.concatenate %18, %11 in 0 : vector<8x1xf32>, vector<4x1xf32> -> vector<12x1xf32>
    %40 = vector.extract_strided_slice %38 {offsets = [0, 0], sizes = [8, 1], strides = [1, 1]} : vector<12x1xf32> to vector<8x1xf32>
    %41 = vector.extract_strided_slice %38 {offsets = [1, 0], sizes = [8, 1], strides = [1, 1]} : vector<12x1xf32> to vector<8x1xf32>
    %42 = vector.extract_strided_slice %38 {offsets = [2, 0], sizes = [8, 1], strides = [1, 1]} : vector<12x1xf32> to vector<8x1xf32>
    %43 = vector.extract_strided_slice %38 {offsets = [3, 0], sizes = [8, 1], strides = [1, 1]} : vector<12x1xf32> to vector<8x1xf32>
    %44 = vector.extract_strided_slice %38 {offsets = [4, 0], sizes = [8, 1], strides = [1, 1]} : vector<12x1xf32> to vector<8x1xf32>
    %45 = vector.extract_strided_slice %39 {offsets = [0, 0], sizes = [8, 1], strides = [1, 1]} : vector<12x1xf32> to vector<8x1xf32>
    %46 = vector.extract_strided_slice %39 {offsets = [1, 0], sizes = [8, 1], strides = [1, 1]} : vector<12x1xf32> to vector<8x1xf32>
    %47 = vector.extract_strided_slice %39 {offsets = [2, 0], sizes = [8, 1], strides = [1, 1]} : vector<12x1xf32> to vector<8x1xf32>
    %48 = vector.extract_strided_slice %39 {offsets = [3, 0], sizes = [8, 1], strides = [1, 1]} : vector<12x1xf32> to vector<8x1xf32>
    %49 = vector.extract_strided_slice %39 {offsets = [4, 0], sizes = [8, 1], strides = [1, 1]} : vector<12x1xf32> to vector<8x1xf32>
    %50 = tpu.concatenate %40, %41, %42, %43, %44, %12 in 1 : vector<8x1xf32>, vector<8x1xf32>, vector<8x1xf32>, vector<8x1xf32>, vector<8x1xf32>, vector<8x123xf32> -> vector<8x128xf32>
    %51 = tpu.concatenate %45, %46, %47, %48, %49, %12 in 1 : vector<8x1xf32>, vector<8x1xf32>, vector<8x1xf32>, vector<8x1xf32>, vector<8x1xf32>, vector<8x123xf32> -> vector<8x128xf32>
    %cst_16 = arith.constant 5.000000e-01 : f32
    %52 = vector.broadcast %cst_16 : f32 to vector<8x128xf32>
    %53 = arith.cmpf ogt, %51, %52 : vector<8x128xf32>
    %54 = vector.broadcast %32 : vector<8x1xf32> to vector<8x128xf32>
    %55 = arith.addf %54, %50 : vector<8x128xf32>
    %cst_17 = arith.constant 0xFF800000 : f32
    %56 = vector.broadcast %cst_17 : f32 to vector<8x128xf32>
    %57 = arith.select %53, %55, %56 : vector<8x128xi1>, vector<8x128xf32>
    %c0_18 = arith.constant 0 : index
    %c0_19 = arith.constant 0 : index
    %c0_20 = arith.constant 0 : index
    %58 = vector.load %arg5[%c0_18, %c0_19, %c0_20] : memref<2x8x128xf32, #tpu.memory_space<vmem>>, vector<1x8x128xf32>
    %59 = vector.shape_cast %58 : vector<1x8x128xf32> to vector<8x128xf32>
    %60 = vector.shape_cast %57 : vector<8x128xf32> to vector<1x8x128xf32>
    tpu.vector_store %arg5[%c0_18, %c0_19, %c0_20], %60 {strides = array<i32>} : memref<2x8x128xf32, #tpu.memory_space<vmem>>, vector<1x8x128xf32>,
    %61 = vector.extract_strided_slice %5 {offsets = [8, 0], sizes = [8, 3], strides = [1, 1]} : vector<16x3xf32> to vector<8x3xf32>
    %62 = vector.extract_strided_slice %61 {offsets = [0, 0], sizes = [8, 1], strides = [1, 1]} : vector<8x3xf32> to vector<8x1xf32>
    %63 = vector.extract_strided_slice %61 {offsets = [0, 1], sizes = [8, 1], strides = [1, 1]} : vector<8x3xf32> to vector<8x1xf32>
    %64 = vector.extract_strided_slice %61 {offsets = [0, 2], sizes = [8, 1], strides = [1, 1]} : vector<8x3xf32> to vector<8x1xf32>
    %c1 = arith.constant 1 : index
    %c0_21 = arith.constant 0 : index
    %c0_22 = arith.constant 0 : index
    %65 = vector.load %arg2[%c1, %c0_21, %c0_22] : memref<2x8x1xf32, #tpu.memory_space<vmem>>, vector<1x8x1xf32>
    %66 = vector.shape_cast %65 : vector<1x8x1xf32> to vector<8x1xf32>
    %67 = arith.mulf %64, %66 : vector<8x1xf32>
    %cst_23 = arith.constant 1.000000e+00 : f32
    %68 = vector.broadcast %cst_23 : f32 to vector<8x1xf32>
    %69 = arith.subf %68, %66 : vector<8x1xf32>
    %70 = tpu.concatenate %67, %69 in 1 : vector<8x1xf32>, vector<8x1xf32> -> vector<8x2xf32>
    %cst_24 = arith.constant dense<0.000000e+00> : vector<8x2xf32>
    %71 = tpu.matmul %10, %70, %cst_24 {dimension_numbers = #tpu.dot_dimension_numbers<[1], [0], [0], [1], [0, 0, 1, 1], [], []>} : vector<8x8xf32>, vector<8x2xf32>, vector<8x2xf32> -> vector<8x2xf32>
    %72 = vector.extract_strided_slice %71 {offsets = [0, 0], sizes = [8, 1], strides = [1, 1]} : vector<8x2xf32> to vector<8x1xf32>
    %73 = vector.extract_strided_slice %71 {offsets = [0, 1], sizes = [8, 1], strides = [1, 1]} : vector<8x2xf32> to vector<8x1xf32>
    %74 = arith.subf %72, %67 : vector<8x1xf32>
    %75 = arith.subf %73, %69 : vector<8x1xf32>
    %cst_25 = arith.constant 5.000000e-01 : f32
    %76 = vector.broadcast %cst_25 : f32 to vector<8x1xf32>
    %77 = arith.cmpf ogt, %75, %76 : vector<8x1xf32>
    %cst_26 = arith.constant 0xFF800000 : f32
    %78 = vector.broadcast %cst_26 : f32 to vector<8x1xf32>
    %79 = arith.select %77, %78, %74 : vector<8x1xi1>, vector<8x1xf32>
    %80 = arith.subf %62, %79 : vector<8x1xf32>
    %cst_27 = arith.constant 5.000000e-01 : f32
    %81 = vector.broadcast %cst_27 : f32 to vector<8x1xf32>
    %82 = arith.cmpf ogt, %73, %81 : vector<8x1xf32>
    %cst_28 = arith.constant 0xFF800000 : f32
    %83 = vector.broadcast %cst_28 : f32 to vector<8x1xf32>
    %84 = arith.select %82, %83, %72 : vector<8x1xi1>, vector<8x1xf32>
    %85 = arith.addf %63, %84 : vector<8x1xf32>
    %86 = tpu.concatenate %85, %11 in 0 : vector<8x1xf32>, vector<4x1xf32> -> vector<12x1xf32>
    %87 = tpu.concatenate %66, %11 in 0 : vector<8x1xf32>, vector<4x1xf32> -> vector<12x1xf32>
    %88 = vector.extract_strided_slice %86 {offsets = [0, 0], sizes = [8, 1], strides = [1, 1]} : vector<12x1xf32> to vector<8x1xf32>
    %89 = vector.extract_strided_slice %86 {offsets = [1, 0], sizes = [8, 1], strides = [1, 1]} : vector<12x1xf32> to vector<8x1xf32>
    %90 = vector.extract_strided_slice %86 {offsets = [2, 0], sizes = [8, 1], strides = [1, 1]} : vector<12x1xf32> to vector<8x1xf32>
    %91 = vector.extract_strided_slice %86 {offsets = [3, 0], sizes = [8, 1], strides = [1, 1]} : vector<12x1xf32> to vector<8x1xf32>
    %92 = vector.extract_strided_slice %86 {offsets = [4, 0], sizes = [8, 1], strides = [1, 1]} : vector<12x1xf32> to vector<8x1xf32>
    %93 = vector.extract_strided_slice %87 {offsets = [0, 0], sizes = [8, 1], strides = [1, 1]} : vector<12x1xf32> to vector<8x1xf32>
    %94 = vector.extract_strided_slice %87 {offsets = [1, 0], sizes = [8, 1], strides = [1, 1]} : vector<12x1xf32> to vector<8x1xf32>
    %95 = vector.extract_strided_slice %87 {offsets = [2, 0], sizes = [8, 1], strides = [1, 1]} : vector<12x1xf32> to vector<8x1xf32>
    %96 = vector.extract_strided_slice %87 {offsets = [3, 0], sizes = [8, 1], strides = [1, 1]} : vector<12x1xf32> to vector<8x1xf32>
    %97 = vector.extract_strided_slice %87 {offsets = [4, 0], sizes = [8, 1], strides = [1, 1]} : vector<12x1xf32> to vector<8x1xf32>
    %98 = tpu.concatenate %88, %89, %90, %91, %92, %12 in 1 : vector<8x1xf32>, vector<8x1xf32>, vector<8x1xf32>, vector<8x1xf32>, vector<8x1xf32>, vector<8x123xf32> -> vector<8x128xf32>
    %99 = tpu.concatenate %93, %94, %95, %96, %97, %12 in 1 : vector<8x1xf32>, vector<8x1xf32>, vector<8x1xf32>, vector<8x1xf32>, vector<8x1xf32>, vector<8x123xf32> -> vector<8x128xf32>
    %cst_29 = arith.constant 5.000000e-01 : f32
    %100 = vector.broadcast %cst_29 : f32 to vector<8x128xf32>
    %101 = arith.cmpf ogt, %99, %100 : vector<8x128xf32>
    %102 = vector.broadcast %80 : vector<8x1xf32> to vector<8x128xf32>
    %103 = arith.addf %102, %98 : vector<8x128xf32>
    %cst_30 = arith.constant 0xFF800000 : f32
    %104 = vector.broadcast %cst_30 : f32 to vector<8x128xf32>
    %105 = arith.select %101, %103, %104 : vector<8x128xi1>, vector<8x128xf32>
    %c1_31 = arith.constant 1 : index
    %c0_32 = arith.constant 0 : index
    %c0_33 = arith.constant 0 : index
    %106 = vector.load %arg5[%c1_31, %c0_32, %c0_33] : memref<2x8x128xf32, #tpu.memory_space<vmem>>, vector<1x8x128xf32>
    %107 = vector.shape_cast %106 : vector<1x8x128xf32> to vector<8x128xf32>
    %108 = vector.shape_cast %105 : vector<8x128xf32> to vector<1x8x128xf32>
    tpu.vector_store %arg5[%c1_31, %c0_32, %c0_33], %108 {strides = array<i32>} : memref<2x8x128xf32, #tpu.memory_space<vmem>>, vector<1x8x128xf32>,
    return
  }
  func.func @transform_0(%arg0: i32) -> (i32, i32) {
    %c0_i32 = arith.constant 0 : i32
    %c0_i32_0 = arith.constant 0 : i32
    return %arg0, %c0_i32 : i32, i32
  }
  func.func @transform_1(%arg0: i32) -> (i32, i32, i32) {
    %c0_i32 = arith.constant 0 : i32
    %c0_i32_0 = arith.constant 0 : i32
    %c0_i32_1 = arith.constant 0 : i32
    return %arg0, %c0_i32, %c0_i32_0 : i32, i32, i32
  }
  func.func @transform_2(%arg0: i32) -> (i32, i32) {
    %c0_i32 = arith.constant 0 : i32
    %c0_i32_0 = arith.constant 0 : i32
    %c0_i32_1 = arith.constant 0 : i32
    return %c0_i32, %c0_i32_0 : i32, i32
  }
  func.func @transform_3(%arg0: i32) -> (i32, i32) {
    %c0_i32 = arith.constant 0 : i32
    %c0_i32_0 = arith.constant 0 : i32
    %c0_i32_1 = arith.constant 0 : i32
    return %c0_i32, %c0_i32_0 : i32, i32
  }
  func.func @transform_4(%arg0: i32) -> (i32, i32, i32) {
    %c0_i32 = arith.constant 0 : i32
    %c0_i32_0 = arith.constant 0 : i32
    %c0_i32_1 = arith.constant 0 : i32
    return %arg0, %c0_i32, %c0_i32_0 : i32, i32, i32
  }
}

</mosaic_0001>

<bundles_post_ra>
// kernel: tpu_custom_call.1
= control target key start
LH: loop header
LB: loop body
LE: loop exit
PB: predicated region body
PF: predicated region fallthrough
CT: control target
= control target key end

     0   :  { %9 = vsyncpa [#allocation3], 0  ;;  %s1187_s0 = inlined_call_operand.vmem [shape: bf16[32,32], index: 0, kind: input, shape index: {}]   ;;  %s1188_s1 = inlined_call_operand.vmem [shape: f32[4,8,1], index: 1, kind: input, shape index: {}]   ;;  %s1189_s2 = inlined_call_operand.vmem [shape: bf16[32,3], index: 2, kind: input, shape index: {}]   ;;  %s1190_s3 = inlined_call_operand.vmem [shape: f32[1,3], index: 3, kind: input, shape index: {}]   ;;  %s1191_s4 = inlined_call_operand.hbm [shape: f32[4,8,128], index: 4, kind: output, shape index: {}]  }
   0x1   :  { %11 = vsyncpa [#allocation3 + $0x1], 0  ;;  %s952_s15 = smov 0   ;;  %s954_s16 = smov 0  }
   0x2   :  { %s956_s17 = smov 0   ;;  %s958_s18 = smov 0  }
   0x3 LB: > { %s973_s19 = sadd.s32 4294967295, %s913_s18   ;;  %s746_s20 = sadd.s32 4294967294, %s913_s18   ;;  %s913_s18 = sphi %s958_s18, %s1197_s18   ;;  %s909_s17 = sphi %s956_s17, %s1196_s17   ;;  %s905_s16 = sphi %s954_s16, %s1195_s16   ;;  %s901_s15 = sphi %s952_s15, %s1194_s15  }
   0x4   : > { %s977_s21 = sadd.s32 1, %s913_s18   ;;  %s118_s22 = sadd.s32 1, %s909_s17 }
   0x5   : > { %s115_s23 = ssub.s32 %s913_s18, %s977_s21  ;;  %p128_p0 = scmp.ne.s32.totalorder %s909_s17, %s905_s16 }
   0x6   : > { %p116_p1 = scmp.eq.s32.totalorder %s115_s23, 0  ;;  %p129_p2 = scmp.eq.s32.totalorder %s973_s19, 1 }
   0x7   : > { %p134_p3 = scmp.ne.s32.totalorder %s905_s16, %s901_s15  ;;  %p135_p4 = scmp.eq.s32.totalorder %s746_s20, 1 }
   0x8   : > { %s988_s24 = scalar_select %p116_p1, %s909_s17, %s118_s22  }
   0x9   : > { %p990_p5 = por %p129_p2, %p128_p0  ;;  %p994_p6 = por %p135_p4, %p134_p3 }
   0xa   : > { %p749_p7 = scmp.ge.s32.totalorder %s913_s18, 1  ;;  %p177_p8 = scmp.lt.s32.totalorder %s913_s18, 3 }
   0xc   : > { %p178_p9 = pnand %p749_p7, %p177_p8 }
   0xd   : > { %v848_v0 = vld [vmem:[%s1189_s2] sm:$0xff] (!%p178_p9)   ;;  %v915_v1 = vmov (!%p178_p9), 0.0   ;;  %v849_v2 = vld [vmem:[%s1189_s2 + $0x8] sm:$0xff] (!%p178_p9)   ;;  %vm916_vm0 = vmmov (!%p178_p9), 0   ;;  %s751_s5 = sshll.u32 (!%p178_p9), %s973_s19, 1  ;;  %vm252_vm1 = vcmask (!%p178_p9), 261120   ;;  %v297_v19 = vlaneseq (!%p178_p9) }
   0xe   : > { %181 = sbr.rel (%p178_p9) target bundleno = 964 (0x3c4), region = 36  ;;  %778 = vmatprep.subr.bf16.mxu0 (!%p178_p9), %v915_v1  ;;  %786 = vmatprep.subr.mxu1 (!%p178_p9), %v915_v1  ;;  %p209_p10 = scmp.lt.s32.totalorder (!%p178_p9), %s751_s5, 3  ;;  %v755_v8 = vld [vmem:[%s1190_s3] ss:$0 sm:$0xff] (!%p178_p9)  ;;  %vm319_vm3 = vcmask (!%p178_p9), 7168   ;;  %vm321_vm4 = vcmask (!%p178_p9), 64512  }
   0xf   : > { %779 = vmatpush3.bf16.msra.mxu0 (!%p178_p9), %v848_v0  ;;  %782 = vmatprep.mubr.msk.bf16.mxu0 (!%p178_p9), %vm916_vm0, %v915_v1  ;;  %s917_s14 = smov (!%p178_p9), 2   ;;  %s918_s20 = smov (!%p178_p9), 1   ;;  %v298_v20 = vshrl.u32 (!%p178_p9), %v297_v19, 7  ;;  %v300_v21 = vand.u32 (!%p178_p9), 127, %v297_v19  ;;  %v920_v35 = vmov (!%p178_p9), 0   ;;  %v1052_v37 = vrot.slane (!%p178_p9), %v915_v1, 1 }
  0x10   : > { %780 = vmatprep.subr.bf16.mxu0 (!%p178_p9), %v915_v1  ;;  %788 = vmatprep.mubr.msk.f32.mxu1 (!%p178_p9), %vm916_vm0, %v915_v1  ;;  %s919_s27 = smov (!%p178_p9), 126   ;;  %vm420_vm6 = vcmask (!%p178_p9), 1046528   ;;  %s921_s28 = smov (!%p178_p9), 127   ;;  %v427_v53 = vrot.slane (!%p178_p9), %v915_v1, 2  ;;  %vm425_vm10 = vcmask (!%p178_p9), 1045504   ;;  %v441_v56 = vrot.slane (!%p178_p9), %v915_v1, 4 }
  0x11   : > { %vm301_vm2 = vcmp.le.s32.totalorder (!%p178_p9), %v300_v21, %v298_v20  ;;  %846 = vset.pattern.permute.xlu0 (!%p178_p9), %v920_v35  ;;  %847 = vset.pattern.permute.xlu1 (!%p178_p9), %v920_v35  ;;  %vm439_vm11 = vcmask (!%p178_p9), 1043456   ;;  %v434_v0 = vrot.slane (!%p178_p9), %v915_v1, 3  ;;  %vm432_vm12 = vcmask (!%p178_p9), 1044480   ;;  %s922_s29 = smov (!%p178_p9), 3   ;;  %s923_s30 = smov (!%p178_p9), 4  }
  0x12   : > { %v760_v24 = vsel (!%p178_p9), %vm301_vm2, 1.0, %v915_v1  ;;  %vm447_vm13 = vcmask (!%p178_p9), 15360   ;;  %vm449_vm14 = vcmask (!%p178_p9), 23552   ;;  %vm451_vm15 = vcmask (!%p178_p9), 31744   ;;  %s770_s9 = sshll.u32 (!%p178_p9), %s973_s19, 8 }
  0x13   : > { %781 = vmatpush3.bf16.msra.mxu0 (!%p178_p9), %v849_v2  ;;  %s1142_s12 = scalar_lea.hbm (!%p178_p9), %s1191_s4, %s770_s9 }
  0x15   : > { %s1199_s5 = smov (!%p209_p10, %s751_s5), 3 }
  0x16   : > { %s752_s6 = sshll.u32 %s1199_s5, 2  ;;  %s754_s7 = sshll.u32 %s1199_s5, 3 }
  0x17   : > { %s212_s10 = scalar_lea.vmem %s1187_s0, %s752_s6  ;;  %s218_s13 = scalar_lea.vmem %s1188_s1, %s754_s7 }
  0x18   : > { %v850_v3 = vld [vmem:[%s212_s10] sm:$0xff]   ;;  %v1024_v5 = vld [vmem:[%s218_s13 + $0x8] sm:$0xff]  ;;  %s205_s5 = sand.u32 1, %s905_s16  }
  0x19   : > { %v1020_v4 = vld [vmem:[%s218_s13] sm:$0xff]  ;;  %783 = vmatmul.mubr.msk.bf16.vlgmr.msra.gmra.mrb[0].mxu0 %vm252_vm1, %v850_v3  ;;  %v496_v18 = vsub.f32 1.0, %v1024_v5  ;;  %v623_v43 = vrot.slane %v1024_v5, 1  ;;  %v638_v57 = vrot.slane %v1024_v5, 4  ;;  %v628_v59 = vrot.slane %v1024_v5, 2  ;;  %s750_s6 = sshll.u32 %s205_s5, 4 }
  0x1a   : > { %306 = vrot.lane.b32.xlu0 %v1020_v4, %s917_s14  ;;  %v310_v6 = vsub.f32 1.0, %v1020_v4  ;;  %v455_v38 = vrot.slane %v1020_v4, 1  ;;  %v460_v50 = vrot.slane %v1020_v4, 2  ;;  %v470_v2 = vrot.slane %v1020_v4, 4  ;;  %s207_s7 = scalar_lea.vmem [#allocation2], %s750_s6  ;;  %s1146_s19 = scalar_lea.sflag [#allocation3], %s205_s5 }
  0x1b   : > { %v624_v49 = vsel %vm420_vm6, %v623_v43, %v1052_v37  ;;  %v639_v61 = vsel %vm439_vm11, %v638_v57, %v441_v56  ;;  %v633_v19 = vrot.slane %v1024_v5, 3  ;;  %s672_s8 = sshll.u32 %s207_s7, 4  ;;  %s1136_s8 = int_to_ptr.vmem [resolvable:$true] %s672_s8 }
  0x1c   : > { %316 = vrot.lane.b32.xlu1 %v310_v6, %s918_s20  ;;  %v456_v42 = vsel %vm420_vm6, %v455_v38, %v1052_v37  ;;  %v461_v58 = vsel %vm425_vm10, %v460_v50, %v427_v53  ;;  %v629_v6 = vsel %vm425_vm10, %v628_v59, %v427_v53  ;;  %s851_s13 = scalar_lea.vmem %s1136_s8, 256 }
  0x1d   : > { %p852_p11 = scmp.ne.s32.totalorder %s1136_s8, %s851_s13 }
  0x1e   : > { %492 = vrot.lane.b32.xlu0 %v1024_v5, %s917_s14 }
  0x1f   : > { %p853_p12 = pnand %p852_p11, %p990_p5 }
  0x21   : > { %p854_p13 = pneg %p853_p12 }
  0x8c   : > { %v307_v7 = vpop.permute.xlu0 %306 }
  0x8e   : > { %v317_v22 = vpop.permute.xlu1 %316 }
  0x90   : > { %v493_v13 = vpop.permute.xlu0 %492 }
  0xec   : > { %v290_v9 = vpop.f32.mrb[0].mxu0 }
  0xed   : > { %v1033_v10 = vadd.f32 %v755_v8, %v290_v9  ;;  %v784_v11 = vpop.f32.mrb[1].mxu0 }
  0xee   : > { %v293_v12 = vpop.f32.mrb[2].mxu0 }
  0xef   : > { %v1035_v14 = vadd.f32 %v755_v8, %v293_v12  ;;  %v785_v15 = vpop.f32.mrb[3].mxu0  ;;  %v309_v16 = vmul.f32 %v307_v7, %v1033_v10  ;;  %v465_v7 = vrot.slane %v1020_v4, 3  ;;  %v471_v8 = vsel %vm439_vm11, %v470_v2, %v441_v56 }
  0xf1   : > { %v495_v17 = vmul.f32 %v493_v13, %v1035_v14  ;;  %312 = vrot.lane.b32.xlu1 %v309_v16, %s919_s27 }
  0xf3   : > { %498 = vrot.lane.b32.xlu0 %v495_v17, %s919_s27 }
  0xf5   : > { %502 = vrot.lane.b32.xlu1 %v496_v18, %s918_s20 }
 0x163   : > { %v313_v23 = vpop.permute.xlu1 %312 }
 0x164   : > { %v320_v25 = vsel %vm319_vm3, %v313_v23, %v317_v22 }
 0x165   : > { %787 = vmatpush3.msra.mxu1 %v320_v25  ;;  %v499_v26 = vpop.permute.xlu0 %498 }
 0x166   : > { %789 = vmatmul.mubr.msk.f32.vlgmr.msra.gmra.mrb[0].mxu1 %vm321_vm4, %v760_v24  ;;  %791 = vmatprep.subr.mxu1 %v915_v1 }
 0x167   : > { %v503_v27 = vpop.permute.xlu1 %502  ;;  %793 = vmatprep.mubr.msk.f32.mxu1 %vm916_vm0, %v915_v1  ;;  %v466_v1 = vsel %vm432_vm12, %v465_v7, %v434_v0  ;;  %vm453_vm0 = vcmask 39936  }
 0x168   : > { %v505_v28 = vsel %vm319_vm3, %v499_v26, %v503_v27 }
 0x169   : > { %792 = vmatpush3.msra.mxu1 %v505_v28 }
 0x16a   : > { %794 = vmatmul.mubr.msk.f32.vlgmr.msra.gmra.mrb[2].mxu1 %vm321_vm4, %v760_v24 }
 0x239   : > { %v391_v29 = vpop.f32.mrb[0].mxu1 }
 0x23a   : > { %v790_v30 = vpop.f32.mrb[1].mxu1  ;;  %v395_v31 = vsub.f32 %v391_v29, %v313_v23  ;;  %v396_v36 = vsub.f32 %v391_v29, %v317_v22  ;;  %vm408_vm8 = vcmp.gt.f32.partialorder %v391_v29, 0.5  ;;  %v634_v22 = vsel %vm432_vm12, %v633_v19, %v434_v0 }
 0x23c   : > { %399 = vrot.lane.b32.xlu0 %v395_v31, %s918_s20  ;;  %vm397_vm5 = vcmp.gt.f32.partialorder %v396_v36, 0.5 }
 0x23d   : > { %v572_v32 = vpop.f32.mrb[2].mxu1 }
 0x23e   : > { %v576_v33 = vsub.f32 %v572_v32, %v499_v26  ;;  %v795_v34 = vpop.f32.mrb[3].mxu1  ;;  %v577_v40 = vsub.f32 %v572_v32, %v503_v27  ;;  %vm589_vm9 = vcmp.gt.f32.partialorder %v572_v32, 0.5 }
 0x240   : > { %410 = vrot.lane.b32.xlu0 %v391_v29, %s918_s20  ;;  %580 = vrot.lane.b32.xlu1 %v576_v33, %s918_s20  ;;  %vm578_vm7 = vcmp.gt.f32.partialorder %v577_v40, 0.5 }
 0x244   : > { %591 = vrot.lane.b32.xlu1 %v572_v32, %s918_s20 }
 0x2ae   : > { %v400_v39 = vpop.permute.xlu0 %399 }
 0x2af   : > { %v402_v41 = vsel %vm397_vm5, -inf, %v400_v39 }
 0x2b0   : > { %404 = vrot.lane.b32.xlu0 %v402_v41, %s921_s28 }
 0x2b2   : > { %v581_v44 = vpop.permute.xlu1 %580  ;;  %v411_v45 = vpop.permute.xlu0 %410 }
 0x2b3   : > { %v583_v46 = vsel %vm578_vm7, -inf, %v581_v44  ;;  %v413_v47 = vsel %vm408_vm8, -inf, %v411_v45 }
 0x2b4   : > { %v1060_v48 = vadd.f32 %v413_v47, %v1033_v10  ;;  %585 = vrot.lane.b32.xlu1 %v583_v46, %s921_s28  ;;  %457 = vrot.lane.b32.xlu0 %v456_v42, %s918_s20 }
 0x2b6   : > { %v592_v51 = vpop.permute.xlu1 %591  ;;  %v426_v54 = vrot.slane %v1060_v48, 2  ;;  %v433_v63 = vrot.slane %v1060_v48, 3  ;;  %v440_v11 = vrot.slane %v1060_v48, 4  ;;  %v421_v36 = vrot.slane %v1060_v48, 1 }
 0x2b7   : > { %v594_v52 = vsel %vm589_vm9, -inf, %v592_v51 }
 0x2b8   : > { %v1070_v55 = vadd.f32 %v594_v52, %v1035_v14  ;;  %625 = vrot.lane.b32.xlu0 %v624_v49, %s918_s20  ;;  %416 = vrot.lane.b32.xlu1 %v1060_v48, %s921_s28  ;;  %v428_v62 = vsel %vm425_vm10, %v426_v54, %v427_v53  ;;  %v435_v9 = vsel %vm432_vm12, %v433_v63, %v434_v0 }
 0x2b9   : > { %v442_v12 = vsel %vm439_vm11, %v440_v11, %v441_v56  ;;  %v423_v44 = vsel %vm420_vm6, %v421_v36, %v1052_v37 }
 0x2ba   : > { %v613_v60 = vrot.slane %v1070_v55, 4  ;;  %v603_v13 = vrot.slane %v1070_v55, 2  ;;  %v608_v16 = vrot.slane %v1070_v55, 3 }
 0x2bc   : > { %462 = vrot.lane.b32.xlu0 %v461_v58, %s917_s14  ;;  %429 = vrot.lane.b32.xlu1 %v428_v62, %s918_s20  ;;  %v614_v3 = vsel %vm439_vm11, %v613_v60, %v441_v56  ;;  %v604_v15 = vsel %vm425_vm10, %v603_v13, %v427_v53  ;;  %v609_v17 = vsel %vm432_vm12, %v608_v16, %v434_v0 }
 0x2c0   : > { %630 = vrot.lane.b32.xlu0 %v629_v6, %s917_s14  ;;  %436 = vrot.lane.b32.xlu1 %v435_v9, %s917_s14 }
 0x2c4   : > { %467 = vrot.lane.b32.xlu0 %v466_v1, %s922_s29  ;;  %443 = vrot.lane.b32.xlu1 %v442_v12, %s922_s29 }
 0x2c8   : > { %597 = vrot.lane.b32.xlu0 %v1070_v55, %s921_s28  ;;  %605 = vrot.lane.b32.xlu1 %v604_v15, %s918_s20 }
 0x2cc   : > { %610 = vrot.lane.b32.xlu1 %v609_v17, %s917_s14  ;;  %s924_s14 = smov [#allocation2]  }
 0x2cd   : > { %s855_s20 = sshll.u32 %s924_s14, 4  ;;  %s856_s20 = int_to_ptr.vmem [resolvable:$false] %s855_s20 }
 0x2ce   : > { %s857_s22 = scalar_lea.vmem %s856_s20, 512  ;;  %p858_p0 = scmp.lt.s32.totalorder %s1136_s8, %s856_s20 }
 0x2cf   : > { %p859_p1 = scmp.lt.s32.totalorder %s857_s22, %s851_s13 }
 0x2d1   : > { %p860_p2 = por %p859_p1, %p858_p0 }
 0x2d3   : > { %p861_p3 = pnand %p860_p2, %p854_p13 }
 0x322   : > { %v405_v18 = vpop.permute.xlu0 %404 }
 0x323   : > { %v407_v20 = vsub.f32 %v1033_v10, %v405_v18 }
 0x325   : > { %483 = vperm.xlu0 %846, %v407_v20  }
 0x326   : > { %v586_v21 = vpop.permute.xlu1 %585  ;;  %v458_v24 = vpop.permute.xlu0 %457 }
 0x327   : > { %v588_v23 = vsub.f32 %v1035_v14, %v586_v21  ;;  %v600_v14 = vrot.slane %v1070_v55, 1  ;;  %v475_v43 = vsel %vm319_vm3, %v1020_v4, %v458_v24 }
 0x329   : > { %651 = vperm.xlu1 %847, %v588_v23   ;;  %635 = vrot.lane.b32.xlu0 %v634_v22, %s922_s29  ;;  %v601_v38 = vsel %vm420_vm6, %v600_v14, %v1052_v37 }
 0x32a   : > { %v417_v25 = vpop.permute.xlu1 %416  ;;  %v626_v26 = vpop.permute.xlu0 %625 }
 0x32b   : > { %v643_v39 = vsel %vm319_vm3, %v1024_v5, %v626_v26  ;;  %v446_v45 = vsel %vm319_vm3, %v417_v25, %v423_v44 }
 0x32d   : > { %615 = vrot.lane.b32.xlu1 %v614_v3, %s922_s29  ;;  %640 = vrot.lane.b32.xlu0 %v639_v61, %s923_s30 }
 0x32e   : > { %v430_v27 = vpop.permute.xlu1 %429  ;;  %v463_v28 = vpop.permute.xlu0 %462 }
 0x32f   : > { %v448_v5 = vsel %vm447_vm13, %v446_v45, %v430_v27  ;;  %v476_v51 = vsel %vm447_vm13, %v475_v43, %v463_v28 }
 0x331   : > { %472 = vrot.lane.b32.xlu1 %v471_v8, %s923_s30 }
 0x332   : > { %v437_v29 = vpop.permute.xlu1 %436  ;;  %v631_v10 = vpop.permute.xlu0 %630 }
 0x333   : > { %v644_v46 = vsel %vm447_vm13, %v643_v39, %v631_v10  ;;  %v450_v37 = vsel %vm449_vm14, %v448_v5, %v437_v29 }
 0x336   : > { %v444_v30 = vpop.permute.xlu1 %443  ;;  %v468_v31 = vpop.permute.xlu0 %467 }
 0x337   : > { %v452_v54 = vsel %vm451_vm15, %v450_v37, %v444_v30  ;;  %v477_v58 = vsel %vm449_vm14, %v476_v51, %v468_v31 }
 0x338   : > { %v454_v60 = vsel %vm453_vm0, %v452_v54, 0.0 }
 0x33a   : > { %v606_v32 = vpop.permute.xlu1 %605  ;;  %v598_v33 = vpop.permute.xlu0 %597 }
 0x33b   : > { %v618_v40 = vsel %vm319_vm3, %v598_v33, %v601_v38 }
 0x33c   : > { %v619_v47 = vsel %vm447_vm13, %v618_v40, %v606_v32 }
 0x33e   : > { %v611_v34 = vpop.permute.xlu1 %610 }
 0x33f   : > { %v620_v48 = vsel %vm449_vm14, %v619_v47, %v611_v34 }
 0x3a4   : > { %v484_v35 = vpop.permute.xlu0 %483 }
 0x3a5   : > { %v486_v63 = vadd.f32 %v484_v35, %v454_v60 }
 0x3a8   : > { %v652_v41 = vpop.permute.xlu1 %651  ;;  %v636_v42 = vpop.permute.xlu0 %635 }
 0x3a9   : > { %v645_v49 = vsel %vm449_vm14, %v644_v46, %v636_v42 }
 0x3ac   : > { %v616_v50 = vpop.permute.xlu1 %615  ;;  %v641_v4 = vpop.permute.xlu0 %640 }
 0x3ad   : > { %v621_v52 = vsel %vm451_vm15, %v620_v48, %v616_v50  ;;  %v646_v53 = vsel %vm451_vm15, %v645_v49, %v641_v4 }
 0x3ae   : > { %v622_v55 = vsel %vm453_vm0, %v621_v52, 0.0  ;;  %v647_v56 = vsel %vm453_vm0, %v646_v53, 0.0 }
 0x3af   : > { %v654_v57 = vadd.f32 %v652_v41, %v622_v55  ;;  %vm648_vm1 = vcmp.gt.f32.partialorder %v647_v56, 0.5 }
 0x3b0   : > { %v473_v59 = vpop.permute.xlu1 %472 }
 0x3b1   : > { %v655_v61 = vsel %vm648_vm1, %v654_v57, -inf  ;;  %v478_v62 = vsel %vm451_vm15, %v477_v58, %v473_v59 }
 0x3b2   : > { %764 = vst [vmem:[%s207_s7 + $0x8] sm:$0xff] %v655_v61  ;;  %v479_v0 = vsel %vm453_vm0, %v478_v62, 0.0 }
 0x3b3   : > { %vm480_vm2 = vcmp.gt.f32.partialorder %v479_v0, 0.5 }
 0x3b4   : > { %v487_v2 = vsel %vm480_vm2, %v486_v63, -inf }
 0x3b5   : > { %488 = vst [vmem:[%s207_s7] sm:$0xff] %v487_v2 }
 0x3b6   : > { %864 = shalt.err (!%p861_p3)
}
 0x3b7   : > { %s865_s23 = scalar_lea.hbm %s1142_s12, 256  ;;  %s869_s29 = scalar_lea.hbm %s1191_s4, 512 }
 0x3b8   : > { %p866_p4 = scmp.ne.s32.totalorder %s1142_s12, %s865_s23  ;;  %p870_p9 = scmp.lt.u32.totalorder %s1142_s12, %s1191_s4 }
 0x3b9   : > { %p871_p10 = scmp.lt.u32.totalorder %s869_s29, %s865_s23  ;;  %p873_p12 = scmp.lt.u32.totalorder %s865_s23, %s1142_s12 }
 0x3ba   : > { %p867_p7 = pnand %p866_p4, %p990_p5 }
 0x3bb   : > { %p872_p11 = por %p871_p10, %p870_p9 }
 0x3bc   : > { %p868_p8 = pneg %p867_p7 }
 0x3bd   : > { %p874_p13 = por %p873_p12, %p872_p11 }
 0x3bf   : > { %p875_p0 = pnand %p874_p13, %p868_p8 }
 0x3c1   : > { %878 = shalt.err (!%p875_p0)
}
 0x3c2   : > { %s925_s6 = smov 128   ;;  %s926_s7 = smov 8  }
 0x3c3   : > { %796 = dma.vmem_to_hbm [thread:$0]  (%p990_p5), %s1136_s8, 256, %s1142_s12, %s1146_s19, %s925_s6, %s925_s6, %s926_s7  }
 0x3c4 PF: > { %p802_p1 = scmp.ge.s32.totalorder %s913_s18, 2  ;;  %s687_s9 = sand.u32 1, %s901_s15  }
 0x3c5   : > { %s688_s10 = scalar_lea.sflag [#allocation3], %s687_s9 }
 0x3c6   : > { %p799_p2 = pnand %p802_p1, %p994_p6 }
 0x3c8   : > { %896 = dma.done.wait (!%p799_p2), %s688_s10, 256  }
 0x3c9   : > { %898 = vsyncadd (!%p799_p2), %s688_s10, 4294967040  ;;  %p14_p3 = scmp.ge.s32.totalorder %s977_s21, 4   ;;  %s1194_s15 = smov %s905_s16 }
 0x3ca   : > { %s1195_s16 = smov %s909_s17  ;;  %s1196_s17 = smov %s988_s24 }
 0x3cb   : > { %s1197_s18 = smov %s977_s21  ;;  %16 = sbr.rel (!%p14_p3) target bundleno = 3 (0x3), region = 76 }
 0x3d2   :  { %693 = vsyncpa [#allocation3], 1 }
 0x3d3   :  { %695 = vsyncpa [#allocation3 + $0x1], 1 }

</bundles_post_ra>
